<compile_context>
chip_gen: v6e
topology: v6e:2x2x1
jax: 0.10.0
libtpu: 0.0.40
codegen_flags: <defaults>
</compile_context>

<pallas_src>
import functools
import math
from typing import MutableMapping, Optional

import jax
import jax.numpy as jnp
from jax import lax
from jax.experimental import pallas as pl
from jax.experimental.pallas import tpu as pltpu


# ----------------------------------------------------------------------------
# helpers
# ----------------------------------------------------------------------------
def _round_up(x: int, m: int) -> int:
    return ((x + m - 1) // m) * m


def _cdiv(a: int, b: int) -> int:
    return (a + b - 1) // b


def _choose_tiling(rows: int, max_tile_rows: int):
    """Pick (tile_rows, grid_steps).

    * tile_rows is a multiple of 8 and <= max_tile_rows,
    * whenever there is enough work the grid has an even number of steps
      (>= 2) so a 2-TensorCore chip (v7x) splits the "parallel" axis evenly,
    * tiny inputs stay a single (possibly partial) block.
    """
    if rows <= 8:
        return 8, 1
    num_tiles = max(2, 2 * _cdiv(rows, 2 * max_tile_rows))
    tile_rows = min(max_tile_rows, _round_up(_cdiv(rows, num_tiles), 8))
    return tile_rows, _cdiv(rows, tile_rows)


_SMEM_SPEC = pl.BlockSpec(memory_space=pltpu.MemorySpace.SMEM)


# ----------------------------------------------------------------------------
# Pallas kernels
# ----------------------------------------------------------------------------
def _rotate_lane_packed_kernel(params_ref, x_ref, o_ref, *, n_ch: int):
    """Rotate x/y channels of lane-packed points.

    Block is (tile_rows, 128); every group of `n_ch` consecutive lanes is one
    point (x, y, z, feats...).  Rotation about z with runtime cos/sin scalars
    from SMEM.  Implemented as a 3-term MAC with per-lane constant coefficient
    vectors so the per-element VPU work is 3 mul + 2 add; the two lane
    rotations go to the XLU (free slot).  Wrap-around lanes of the rolls are
    multiplied by zero coefficients and never leak into the result.
    """
    cos_a = params_ref[0]
    sin_a = params_ref[1]
    blk = x_ref[...]
    n_lanes = blk.shape[-1]  # 128

    # Per-lane channel id on a single (1, 128) row — broadcast over sublanes.
    lane_ch = lax.broadcasted_iota(jnp.int32, (1, n_lanes), 1) % n_ch
    is_x = lane_ch == 0
    is_y = lane_ch == 1
    a = jnp.where(is_x | is_y, cos_a, 1.0)   # cos on x/y lanes, identity elsewhere
    b = jnp.where(is_x, -sin_a, 0.0)         # multiplies y brought onto x lanes
    c = jnp.where(is_y, sin_a, 0.0)          # multiplies x brought onto y lanes

    y_at_x = pltpu.roll(blk, shift=n_lanes - 1, axis=1)   # lane i <- lane i+1
    x_at_y = pltpu.roll(blk, shift=1, axis=1)              # lane i <- lane i-1

    o_ref[...] = (blk * a + y_at_x * b + x_at_y * c).astype(o_ref.dtype)


def _rotate_smallc_kernel(params_ref, x_ref, o_ref):
    """Fallback rotation for channel counts that do not divide 128 (C=5,6,...).

    Block is (tile_n, C); lane-sparse but correct.  x/y are columns 0/1.
    """
    cos_a = params_ref[0]
    sin_a = params_ref[1]
    blk = x_ref[...]
    ch = lax.broadcasted_iota(jnp.int32, blk.shape, 1)
    x_col = blk[:, 0:1]
    y_col = blk[:, 1:2]
    new_x = cos_a * x_col - sin_a * y_col
    new_y = sin_a * x_col + cos_a * y_col
    out = jnp.where(ch == 0, new_x, jnp.where(ch == 1, new_y, blk))
    o_ref[...] = out.astype(o_ref.dtype)


def _affine_kernel(params_ref, x_ref, o_ref):
    """Elementwise x * scale + shift on a lane-packed (tile_rows, 128) block."""
    o_ref[...] = (x_ref[...] * params_ref[0] + params_ref[1]).astype(o_ref.dtype)


# ----------------------------------------------------------------------------
# Wrappers
# ----------------------------------------------------------------------------
@functools.partial(jax.jit, static_argnames=("max_tile_rows",))
def rotate_points(points, cos_a, sin_a, *, max_tile_rows: int = 4096):
    """Rotate x/y (columns 0/1) of an [N, C] point cloud about the z-axis.

    cos_a / sin_a are runtime SMEM scalars, so new angles reuse the compiled
    kernel; only new shapes compile.
    """
    n, c = points.shape
    if c < 2:
        raise ValueError("point clouds need at least x and y channels")
    params = jnp.stack(
        [jnp.asarray(cos_a, jnp.float32), jnp.asarray(sin_a, jnp.float32)]
    )

    if 128 % c != 0:
        # Generic lane-sparse path (correct for any C, e.g. xyz+intensity+ring).
        # No reshape/pad/slice at all; partial last block handled by Pallas.
        tile_n, grid = _choose_tiling(n, max_tile_rows)
        return pl.pallas_call(
            _rotate_smallc_kernel,
            out_shape=jax.ShapeDtypeStruct((n, c), points.dtype),
            grid=(grid,),
            in_specs=[_SMEM_SPEC, pl.BlockSpec((tile_n, c), lambda i: (i, 0))],
            out_specs=pl.BlockSpec((tile_n, c), lambda i: (i, 0)),
            compiler_params=pltpu.CompilerParams(
                dimension_semantics=("parallel",)
            ),
            cost_estimate=pl.CostEstimate(
                flops=6 * n, transcendentals=0, bytes_accessed=2 * n * c * 4
            ),
        )(params, points)

    # Lane-dense fast path: view [N, C] as [rows, 128] (contiguous reshape).
    total = n * c
    rows = _cdiv(total, 128)
    pad = rows * 128 - total
    flat = points.reshape(-1)
    if pad:
        # Only the <128-element remainder is padded; when N*C is a multiple
        # of 128 there is no extra copy at all.
        flat = jnp.pad(flat, (0, pad))
    packed = flat.reshape(rows, 128)

    tile_rows, grid = _choose_tiling(rows, max_tile_rows)
    out = pl.pallas_call(
        functools.partial(_rotate_lane_packed_kernel, n_ch=c),
        out_shape=jax.ShapeDtypeStruct((rows, 128), points.dtype),
        grid=(grid,),
        in_specs=[_SMEM_SPEC, pl.BlockSpec((tile_rows, 128), lambda i: (i, 0))],
        out_specs=pl.BlockSpec((tile_rows, 128), lambda i: (i, 0)),
        # `packed` is always a fresh intermediate; donate it to the output.
        input_output_aliases={1: 0},
        compiler_params=pltpu.CompilerParams(dimension_semantics=("parallel",)),
        cost_estimate=pl.CostEstimate(
            flops=5 * rows * 128, transcendentals=0, bytes_accessed=2 * rows * 128 * 4
        ),
    )(params, packed)

    flat_out = out.reshape(-1)
    if pad:
        flat_out = flat_out[:total]
    return flat_out.reshape(n, c)


@functools.partial(jax.jit, static_argnames=("max_tile_rows",))
def photometric_affine(img, scale, shift, *, max_tile_rows: int = 4096):
    """img: [C, H, W] -> x * scale + shift, lane-packed as [rows, 128]."""
    orig_shape = img.shape
    total = int(img.size)
    params = jnp.stack(
        [jnp.asarray(scale, jnp.float32), jnp.asarray(shift, jnp.float32)]
    )
    rows = _cdiv(total, 128)
    pad = rows * 128 - total
    flat = img.reshape(-1)
    if pad:
        flat = jnp.pad(flat, (0, pad))
    packed = flat.reshape(rows, 128)

    tile_rows, grid = _choose_tiling(rows, max_tile_rows)
    out = pl.pallas_call(
        _affine_kernel,
        out_shape=jax.ShapeDtypeStruct((rows, 128), img.dtype),
        grid=(grid,),
        in_specs=[_SMEM_SPEC, pl.BlockSpec((tile_rows, 128), lambda i: (i, 0))],
        out_specs=pl.BlockSpec((tile_rows, 128), lambda i: (i, 0)),
        input_output_aliases={1: 0},
        compiler_params=pltpu.CompilerParams(dimension_semantics=("parallel",)),
        cost_estimate=pl.CostEstimate(
            flops=2 * rows * 128, transcendentals=0, bytes_accessed=2 * rows * 128 * 4
        ),
    )(params, packed)

    flat_out = out.reshape(-1)
    if pad:
        flat_out = flat_out[:total]
    return flat_out.reshape(orig_shape)


# ----------------------------------------------------------------------------
# Augmentation base class (forward semantics mirror the PyTorch module exactly)
# ----------------------------------------------------------------------------
class Augmentation:
    def __init__(self, apply_to: set):
        self.apply_to = apply_to

    def __str__(self):
        return str(self.__class__.__name__)

    # abstract in the reference; concrete subclass below implements them
    def lidar(self, data, metadata):  # pragma: no cover - abstract
        raise NotImplementedError

    def camera(self, data, metadata):  # pragma: no cover - abstract
        raise NotImplementedError

    def radar(self, data, metadata):  # pragma: no cover - abstract
        raise NotImplementedError

    def targets(self, targets):  # pragma: no cover - abstract
        raise NotImplementedError

    def metadata(self, metadata):  # pragma: no cover - abstract
        raise NotImplementedError

    def forward(
        self,
        lidar: Optional[MutableMapping],
        camera: Optional[MutableMapping],
        radar: Optional[MutableMapping],
        targets,
        metadata: Optional[MutableMapping],
    ):
        # (torch.no_grad is implicit: JAX only differentiates when asked to)
        if metadata is None:
            metadata = {}
        if "augmentations" not in metadata:
            metadata["augmentations"] = {}
        metadata["augmentations"][str(self)] = {}
        metadata = self.metadata(metadata)
        # TODO(synk): same-shape tensors of one modality could be batched into
        # a single pallas_call to amortize launch overhead for tiny tensors.
        if lidar is not None and "lidar" in self.apply_to:
            for key, value in lidar.items():
                lidar[key] = self.lidar(value, metadata)
        if camera is not None and "camera" in self.apply_to:
            for key, value in camera.items():
                camera[key] = self.camera(value, metadata)
        if radar is not None and "radar" in self.apply_to:
            for key, value in radar.items():
                radar[key] = self.radar(value, metadata)
        if targets is not None and "targets" in self.apply_to:
            targets = self.targets(targets)
        return (lidar, camera, radar, targets, metadata)

    __call__ = forward


# ----------------------------------------------------------------------------
# Deterministic concrete augmentation (kernels do the heavy lifting)
# ----------------------------------------------------------------------------
class DeterministicRotation(Augmentation):
    """Rotate point clouds about the z-axis by a fixed angle; apply a
    deterministic photometric affine to camera images."""

    def __init__(self, apply_to: set, angle_rad: float):
        super().__init__(apply_to)
        self.angle = float(angle_rad)
        self.cos_a = math.cos(self.angle)
        self.sin_a = math.sin(self.angle)
        # deterministic photometric parameters
        self.cam_scale = 1.0 + 0.1 * math.sin(self.angle)
        self.cam_shift = 0.05

    def metadata(self, metadata):
        metadata["augmentations"][str(self)]["angle"] = self.angle
        return metadata

    def lidar(self, data, metadata):
        return rotate_points(data, self.cos_a, self.sin_a)

    def radar(self, data, metadata):
        return rotate_points(data, self.cos_a, self.sin_a)

    def camera(self, data, metadata):
        return photometric_affine(data, self.cam_scale, self.cam_shift)

    def targets(self, targets):
        # TODO(synk): `Targets` is an external dataclass (boxes/labels) with no
        # definition in the reference snippet; passed through unchanged.
        return targets


# ----------------------------------------------------------------------------
# Demo / correctness smoke-test
# ----------------------------------------------------------------------------
if __name__ == "__main__":
    key = jax.random.PRNGKey(0)
    k_lidar, k_radar, k_cam = jax.random.split(key, 3)

    N_LIDAR, C_LIDAR = 128, 8    # lane-dense fast path (8 | 128), N*C % 128 == 0
    N_RADAR, C_RADAR = 100, 6    # ragged N, C does not divide 128 -> generic path
    C_IMG, H, W = 3, 32, 32

    lidar = {"points": jax.random.normal(k_lidar, (N_LIDAR, C_LIDAR), jnp.float32)}
    radar = {"points": jax.random.normal(k_radar, (N_RADAR, C_RADAR), jnp.float32)}
    camera = {"image": jax.random.uniform(k_cam, (C_IMG, H, W), jnp.float32)}

    aug = DeterministicRotation(
        apply_to={"lidar", "camera", "radar", "targets"},
        angle_rad=math.pi / 6,
    )

    # references computed BEFORE running the kernels (inputs may be donated)
    def ref_rotate(pts, cos_a, sin_a):
        c = pts.shape[1]
        rot = jnp.eye(c, dtype=jnp.float32)
        rot = rot.at[0, 0].set(cos_a).at[0, 1].set(-sin_a)
        rot = rot.at[1, 0].set(sin_a).at[1, 1].set(cos_a)
        return pts @ rot.T

    ref_lidar = ref_rotate(lidar["points"], aug.cos_a, aug.sin_a)
    ref_radar = ref_rotate(radar["points"], aug.cos_a, aug.sin_a)
    ref_cam = camera["image"] * aug.cam_scale + aug.cam_shift

    lidar_o, camera_o, radar_o, targets_o, metadata_o = aug(
        lidar=dict(lidar), camera=dict(camera), radar=dict(radar),
        targets=None, metadata=None,
    )
    jax.block_until_ready((lidar_o["points"], camera_o["image"], radar_o["points"]))

    assert jnp.allclose(lidar_o["points"], ref_lidar, atol=1e-5)
    assert jnp.allclose(radar_o["points"], ref_radar, atol=1e-5)
    assert jnp.allclose(camera_o["image"], ref_cam, atol=1e-6)
    assert lidar_o["points"].shape == lidar["points"].shape
    assert radar_o["points"].shape == radar["points"].shape
    assert camera_o["image"].shape == camera["image"].shape
    assert metadata_o["augmentations"]["DeterministicRotation"]["angle"] == aug.angle

    # A second augmentation with a different angle reuses the compiled kernels
    # (parameters are runtime SMEM scalars; only shapes are static).
    aug2 = DeterministicRotation(apply_to={"lidar"}, angle_rad=0.5)
    lidar2_o, *_ = aug2(
        lidar=dict(lidar), camera=None, radar=None, targets=None, metadata=None
    )
    jax.block_until_ready(lidar2_o["points"])
    ref_lidar2 = ref_rotate(lidar["points"], aug2.cos_a, aug2.sin_a)
    assert jnp.allclose(lidar2_o["points"], ref_lidar2, atol=1e-5)

    print("KERNEL_OK")
</pallas_src>

<mosaic_0001>
module attributes {stable_mosaic.version = 11 : i64} {
  func.func @_rotate_lane_packed_kernel(%arg0: i32, %arg1: memref<2xf32, #tpu.memory_space<smem>>, %arg2: memref<8x128xf32, #tpu.memory_space<vmem>>, %arg3: memref<8x128xf32, #tpu.memory_space<vmem>>) attributes {dimension_semantics = [#tpu.dimension_semantics<parallel>], iteration_bounds = array<i64: 1>, scalar_prefetch = 0 : i64, scratch_operands = 0 : i64, tpu.core_type = #tpu.core_type<tc>, window_params = [{transform_indices = @transform_0, window_bounds = array<i64: 2>}, {transform_indices = @transform_1, window_bounds = array<i64: 8, 128>}, {transform_indices = @transform_2, window_bounds = array<i64: 8, 128>}]} {
    %c0 = arith.constant 0 : index
    %0 = memref.load %arg1[%c0] : memref<2xf32, #tpu.memory_space<smem>>
    %c1 = arith.constant 1 : index
    %1 = memref.load %arg1[%c1] : memref<2xf32, #tpu.memory_space<smem>>
    %c0_0 = arith.constant 0 : index
    %c0_1 = arith.constant 0 : index
    %2 = vector.load %arg2[%c0_0, %c0_1] : memref<8x128xf32, #tpu.memory_space<vmem>>, vector<8x128xf32>
    %3 = tpu.iota {dimensions = array<i32: 1>} : vector<1x128xi32>
    %c8_i32 = arith.constant 8 : i32
    %c0_i32 = arith.constant 0 : i32
    %4 = arith.cmpi eq, %c8_i32, %c0_i32 : i32
    %c1_i32 = arith.constant 1 : i32
    %5 = arith.select %4, %c1_i32, %c8_i32 : i32
    %6 = vector.broadcast %5 : i32 to vector<1x128xi32>
    %7 = arith.remsi %3, %6 : vector<1x128xi32>
    %c0_i32_2 = arith.constant 0 : i32
    %8 = vector.broadcast %c0_i32_2 : i32 to vector<1x128xi32>
    %9 = arith.cmpi ne, %7, %8 : vector<1x128xi32>
    %c0_i32_3 = arith.constant 0 : i32
    %10 = vector.broadcast %c0_i32_3 : i32 to vector<1x128xi32>
    %11 = arith.cmpi slt, %7, %10 : vector<1x128xi32>
    %c0_i32_4 = arith.constant 0 : i32
    %12 = arith.cmpi slt, %5, %c0_i32_4 : i32
    %13 = vector.broadcast %12 : i1 to vector<1x128xi1>
    %14 = vector.broadcast %13 : vector<1x128xi1> to vector<1x128xi1>
    %15 = arith.xori %11, %14 : vector<1x128xi1>
    %16 = arith.andi %15, %9 : vector<1x128xi1>
    %17 = vector.broadcast %5 : i32 to vector<1x128xi32>
    %18 = arith.addi %7, %17 : vector<1x128xi32>
    %19 = arith.select %16, %18, %7 : vector<1x128xi1>, vector<1x128xi32>
    %c0_i32_5 = arith.constant 0 : i32
    %20 = vector.broadcast %c0_i32_5 : i32 to vector<1x128xi32>
    %21 = arith.cmpi eq, %19, %20 : vector<1x128xi32>
    %c1_i32_6 = arith.constant 1 : i32
    %22 = vector.broadcast %c1_i32_6 : i32 to vector<1x128xi32>
    %23 = arith.cmpi eq, %19, %22 : vector<1x128xi32>
    %24 = arith.ori %21, %23 : vector<1x128xi1>
    %cst = arith.constant 1.000000e+00 : f32
    %25 = vector.broadcast %0 : f32 to vector<1x128xf32>
    %26 = vector.broadcast %cst : f32 to vector<1x128xf32>
    %27 = arith.select %24, %25, %26 : vector<1x128xi1>, vector<1x128xf32>
    %cst_7 = arith.constant 0.000000e+00 : f32
    %28 = arith.subf %cst_7, %1 : f32
    %cst_8 = arith.constant 0.000000e+00 : f32
    %29 = vector.broadcast %28 : f32 to vector<1x128xf32>
    %30 = vector.broadcast %cst_8 : f32 to vector<1x128xf32>
    %31 = arith.select %21, %29, %30 : vector<1x128xi1>, vector<1x128xf32>
    %cst_9 = arith.constant 0.000000e+00 : f32
    %32 = vector.broadcast %1 : f32 to vector<1x128xf32>
    %33 = vector.broadcast %cst_9 : f32 to vector<1x128xf32>
    %34 = arith.select %23, %32, %33 : vector<1x128xi1>, vector<1x128xf32>
    %c127_i32 = arith.constant 127 : i32
    %35 = tpu.dynamic_rotate %2 by %c127_i32 dim 1 : vector<8x128xf32>, i32 -> vector<8x128xf32>
    %c1_i32_10 = arith.constant 1 : i32
    %36 = tpu.dynamic_rotate %2 by %c1_i32_10 dim 1 : vector<8x128xf32>, i32 -> vector<8x128xf32>
    %37 = vector.broadcast %27 : vector<1x128xf32> to vector<8x128xf32>
    %38 = arith.mulf %2, %37 : vector<8x128xf32>
    %39 = vector.broadcast %31 : vector<1x128xf32> to vector<8x128xf32>
    %40 = arith.mulf %35, %39 : vector<8x128xf32>
    %41 = arith.addf %38, %40 : vector<8x128xf32>
    %42 = vector.broadcast %34 : vector<1x128xf32> to vector<8x128xf32>
    %43 = arith.mulf %36, %42 : vector<8x128xf32>
    %44 = arith.addf %41, %43 : vector<8x128xf32>
    %c0_11 = arith.constant 0 : index
    %c0_12 = arith.constant 0 : index
    %45 = vector.load %arg3[%c0_11, %c0_12] : memref<8x128xf32, #tpu.memory_space<vmem>>, vector<8x128xf32>
    tpu.vector_store %arg3[%c0_11, %c0_12], %44 {strides = array<i32>} : memref<8x128xf32, #tpu.memory_space<vmem>>, vector<8x128xf32>,
    return
  }
  func.func @transform_0(%arg0: i32) -> i32 {
    %c0_i32 = arith.constant 0 : i32
    %c0_i32_0 = arith.constant 0 : i32
    return %c0_i32 : i32
  }
  func.func @transform_1(%arg0: i32) -> (i32, i32) {
    %c0_i32 = arith.constant 0 : i32
    %c0_i32_0 = arith.constant 0 : i32
    return %arg0, %c0_i32 : i32, i32
  }
  func.func @transform_2(%arg0: i32) -> (i32, i32) {
    %c0_i32 = arith.constant 0 : i32
    %c0_i32_0 = arith.constant 0 : i32
    return %arg0, %c0_i32 : i32, i32
  }
}

</mosaic_0001>

<bundles_post_ra>
// kernel: rotate_points.1
= control target key start
LH: loop header
LB: loop body
LE: loop exit
PB: predicated region body
PF: predicated region fallthrough
CT: control target
= control target key end

     0   :  { %7 = vsyncpa [#allocation3], 0  ;;  %s111_s0 = inlined_call_operand.vmem [shape: f32[2], index: 0, kind: input, shape index: {}]   ;;  %s112_s1 = inlined_call_operand.vmem [shape: f32[8,128], index: 1, kind: input, shape index: {}, may-alias: {1,2}]   ;;  %s113_s2 = inlined_call_operand.vmem [shape: f32[8,128], index: 2, kind: output, shape index: {}, may-alias: {1,2}]  }
   0x1   :  { %s14_s11 = sshll.u32 %s111_s0, 4  ;;  %s15_s11 = int_to_ptr.vmem [resolvable:$true] %s14_s11 }
   0x2   :  { %s70_s12 = scalar_lea.vmem %s15_s11, 16  ;;  %p75_p1 = scmp.lt.s32.totalorder %s15_s11, %s15_s11 }
   0x3   :  { %p71_p0 = scmp.ne.s32.totalorder %s15_s11, %s70_s12  ;;  %p76_p2 = scmp.lt.s32.totalorder %s70_s12, %s70_s12 }
   0x5   :  { %p77_p3 = por %p76_p2, %p75_p1 }
   0x7   :  { %p78_p4 = pnand %p77_p3, %p71_p0 }
   0x9   :  { %81 = shalt.err (!%p78_p4)
}
   0xa   :  { %s84_s13 = smov [#allocation2]  }
   0xb   :  { %17 = dma.vmem_to_smem %s15_s11, 16, %s84_s13, [#allocation3]  }
   0xc   :  { %82 = dma.done.wait [#allocation3], 16  }
   0xd   :  { %83 = vsyncadd [#allocation3], 4294967280 }
   0xe   :  { %23 = sfence }
   0xf   :  { %v26_v0 = vld [vmem:[%s112_s1] sm:$0xff]  ;;  %s85_s16 = smov 127   ;;  %s86_s0 = smov 1   ;;  %v27_v1 = vlaneseq }
  0x10   :  { %51 = vrot.lane.b32.xlu0 %v26_v0, %s85_s16  ;;  %s66_s17 = sld [smem:[#allocation2 + $0x1]] }
  0x11   :  { %v28_v2 = vand.u32 127, %v27_v1  ;;  %s24_s18 = sld [smem:[#allocation2]] }
  0x13   :  { %v33_v3 = vand.u32 7, %v28_v2 }
  0x14   :  { %53 = vrot.lane.b32.xlu0 %v26_v0, %s86_s0 }
  0x15   :  { %vm41_vm0 = vcmp.eq.s32.totalorder %v33_v3, 0  ;;  %vm42_vm1 = vcmp.eq.s32.totalorder %v33_v3, 1 }
  0x16   :  { %s46_s19 = ssub.f32 0.0, %s66_s17  ;;  %vm43_vm2 = vmor %vm41_vm0, %vm42_vm1  ;;  %v49_v8 = vstv %s66_s17 }
  0x17   :  { %v44_v4 = vstv %s24_s18  ;;  %v50_v12 = vsel %vm42_vm1, %v49_v8, 0.0 }
  0x18   :  { %v47_v5 = vstv %s46_s19  ;;  %v45_v6 = vsel %vm43_vm2, %v44_v4, 1.0 }
  0x19   :  { %v48_v7 = vsel %vm41_vm0, %v47_v5, 0.0  ;;  %v55_v10 = vmul.f32 %v45_v6, %v26_v0 }
  0x82   :  { %v52_v9 = vpop.permute.xlu0 %51 }
  0x83   :  { %v56_v11 = vmul.f32 %v52_v9, %v48_v7 }
  0x85   :  { %v57_v14 = vadd.f32 %v56_v11, %v55_v10 }
  0x86   :  { %v54_v13 = vpop.permute.xlu0 %53 }
  0x87   :  { %v58_v15 = vmul.f32 %v54_v13, %v50_v12 }
  0x89   :  { %v59_v16 = vadd.f32 %v58_v15, %v57_v14 }
  0x8b   :  { %60 = vst [vmem:[%s113_s2] sm:$0xff] %v59_v16 }
  0x8c   :  { %65 = vsyncpa [#allocation3], 1 }

</bundles_post_ra>
